<compile_context>
chip_gen: v7x
topology: tpu7x:2x2x1
jax: 0.10.0
libtpu: 0.0.40
codegen_flags: <defaults>
</compile_context>

<pallas_src>
import functools
from dataclasses import dataclass
from typing import Optional

import jax
import jax.numpy as jnp
from jax import lax
from jax.experimental import pallas as pl
from jax.experimental.pallas import tpu as pltpu


@dataclass
class VectorSpinModelOutput:
    afe: Optional[jax.Array]
    t_star: jax.Array
    magnetizations: Optional[jax.Array]
    internal_energy: Optional[jax.Array]
    log_prob: Optional[jax.Array]


def _spin_kernel(beta_ref, t0_ref, lam_ref, q_ref, h_ref, tstar_ref, mag_ref,
                 *, dim, max_iter, tol):
    f32 = jnp.float32
    N = q_ref.shape[0]
    BtD = h_ref.shape[1]
    D = dim
    Bt = BtD // D

    beta = beta_ref[0]
    t0 = t0_ref[0]
    lam = lam_ref[...]            # (N, 1)   eigenvalues of J
    Q = q_ref[...]                # (N, N)   eigenvectors (columns)
    hw = h_ref[...]               # (N, Bt*D): h[b, i, f] stored at [i, b*D + f]

    # Column <-> batch selector matrices (built once, hoisted out of the loop).
    p_i = lax.broadcasted_iota(jnp.int32, (BtD, Bt), 0)
    b_i = lax.broadcasted_iota(jnp.int32, (BtD, Bt), 1)
    S = jnp.logical_and(p_i >= b_i * D, p_i < (b_i + 1) * D).astype(f32)    # (BtD, Bt)
    b_j = lax.broadcasted_iota(jnp.int32, (Bt, BtD), 0)
    p_j = lax.broadcasted_iota(jnp.int32, (Bt, BtD), 1)
    St = jnp.logical_and(p_j >= b_j * D, p_j < (b_j + 1) * D).astype(f32)   # (Bt, BtD)

    # Prologue (once per block): rotate h into the eigenbasis, reduce over dim.
    g = lax.dot_general(Q, hw, (((0,), (0,)), ((), ())),
                        preferred_element_type=f32)                         # Q^T h, (N, BtD)
    w = jnp.dot(g * g, S, preferred_element_type=f32)                       # (N, Bt): sum_f g^2

    beta_n = beta * N

    def jac_hess(t):
        # t: (1, Bt).  A = inv(t I - J) = Q diag(r) Q^T with r = 1/(t - lam).
        r = 1.0 / (t - lam)                                    # (N, Bt)
        r2 = r * r
        sr = jnp.sum(r, axis=0, keepdims=True)                 # tr(A)
        sr2 = jnp.sum(r2, axis=0, keepdims=True)               # tr(A A)
        swr2 = jnp.sum(w * r2, axis=0, keepdims=True)          # h^T A^T A h
        swr3 = jnp.sum(w * r2 * r, axis=0, keepdims=True)      # h^T A^3 h
        jac = beta_n - 0.5 * sr - 0.25 * beta * swr2
        hess = 0.5 * sr2 + 0.5 * beta * swr3
        return jac, hess

    # Newton iteration on t (RootFind forward, use_analytical_grads=True).
    # Converged elements freeze; the loop exits once all are below tol.
    # TODO(synk): RootFind's implicit-function backward solver is not reproduced
    # here (forward values only).
    def cond(carry):
        i, _, err = carry
        return jnp.logical_and(i < max_iter, err >= tol)

    def body(carry):
        i, t, _ = carry
        jac, hess = jac_hess(t)
        hess_safe = jnp.where(jnp.abs(hess) > 1e-30, hess, jnp.float32(1e-30))
        t_new = jnp.where(jnp.abs(jac) < tol, t, t - jac / hess_safe)
        return i + 1, t_new, jnp.max(jnp.abs(jac))

    t_init = jnp.full((1, Bt), t0, dtype=f32)
    _, t_star, _ = lax.while_loop(
        cond, body, (jnp.int32(0), t_init, jnp.float32(jnp.inf)))

    # Magnetizations = beta/4 * (A + A^T) h = beta/2 * Q diag(1/(t*-lam)) Q^T h,
    # reusing g and the final reciprocals (no extra inverse in the epilogue).
    r_star = 1.0 / (t_star - lam)                               # (N, Bt)
    r_exp = jnp.dot(r_star, St, preferred_element_type=f32)     # (N, BtD)
    mag = 0.5 * beta * jnp.dot(Q, r_exp * g, preferred_element_type=f32)

    tstar_ref[...] = jnp.dot(t_star, St,
                             preferred_element_type=f32).astype(tstar_ref.dtype)
    mag_ref[...] = mag.astype(mag_ref.dtype)


def _pick_batch_block(B, D):
    """Smallest divisor Bt of B whose lane width Bt*D is a multiple of 128; else
    the whole batch in one grid step (block == full array is always legal)."""
    for bt in range(1, B):
        if B % bt == 0 and (bt * D) % 128 == 0:
            return bt
    # TODO(synk): pad B*D to a lane multiple for very large batches with D not a
    # divisor of 128; at typical sizes the full-batch block is fine.
    return B


def vector_spin_forward(J_raw, h, beta, t0, *,
                        J_symmetric=True, J_traceless=True,
                        solver_fwd_max_iter=40, solver_fwd_tol=1e-5):
    """Pallas implementation of VectorSpinModel.forward (default flags).

    J_raw : (N, N) internal coupling parameter (J_external=False)
    h     : (B, N, D)
    beta  : (1,) float32
    t0    : (1,) float32   (scalar-t case: one auxiliary variable per example)
    """
    B, N, D = h.shape
    if not J_symmetric:
        # TODO(synk): eigendecomposition fast path requires symmetric J; the
        # non-symmetric couplings path is not implemented.
        raise NotImplementedError("Only J_symmetric=True is supported.")

    # Parameter setup (plain JAX glue): symmetrize + remove diagonal, then
    # eigendecompose the tiny (N, N) couplings once: J = Q diag(lam) Q^T.
    J = J_raw.astype(jnp.float32)
    J = 0.5 * (J + J.T)
    if J_traceless:
        J = J * (1.0 - jnp.eye(N, dtype=jnp.float32))
    lam, Qm = jnp.linalg.eigh(J)
    lam = lam.astype(jnp.float32).reshape(N, 1)
    Qm = Qm.astype(jnp.float32)

    # Lane-dense layout for the kernel: hw[i, b*D + f] = h[b, i, f].
    hw = jnp.transpose(h.astype(jnp.float32), (1, 0, 2)).reshape(N, B * D)

    Bt = _pick_batch_block(B, D)
    grid = (B // Bt,)

    kernel = functools.partial(_spin_kernel, dim=D,
                               max_iter=solver_fwd_max_iter,
                               tol=solver_fwd_tol)

    t_lane, mag_w = pl.pallas_call(
        kernel,
        out_shape=(
            jax.ShapeDtypeStruct((1, B * D), jnp.float32),   # t*, broadcast over D lanes
            jax.ShapeDtypeStruct((N, B * D), jnp.float32),   # magnetizations (slab layout)
        ),
        grid=grid,
        in_specs=[
            pl.BlockSpec(memory_space=pltpu.MemorySpace.SMEM),      # beta (1,)
            pl.BlockSpec(memory_space=pltpu.MemorySpace.SMEM),      # t0   (1,)
            pl.BlockSpec((N, 1), lambda b: (0, 0)),                 # lam  (N, 1)
            pl.BlockSpec((N, N), lambda b: (0, 0)),                 # Q    (N, N)
            pl.BlockSpec((N, Bt * D), lambda b: (0, b)),            # h slab
        ],
        out_specs=(
            pl.BlockSpec((1, Bt * D), lambda b: (0, b)),            # t_star (broadcast)
            pl.BlockSpec((N, Bt * D), lambda b: (0, b)),            # magnetizations
        ),
        compiler_params=pltpu.CompilerParams(
            dimension_semantics=("parallel",)),                     # batch blocks independent
    )(beta.astype(jnp.float32), t0.astype(jnp.float32), lam, Qm, hw)

    t_star = t_lane.reshape(B, D)[:, :1]
    mags = jnp.transpose(mag_w.reshape(N, B, D), (1, 0, 2))
    return VectorSpinModelOutput(
        afe=None,
        t_star=t_star,
        magnetizations=mags,
        internal_energy=None,
        log_prob=None,
    )


def _reference_forward(J_raw, h, beta, t0, max_iter=40, tol=1e-5):
    """Pure-JAX reference (direct matrix-inverse path, fixed Newton schedule)."""
    B, N, D = h.shape
    J = 0.5 * (J_raw + J_raw.T)
    J = J * (1.0 - jnp.eye(N))
    eye = jnp.eye(N, dtype=jnp.float32)

    def per_batch(hb):
        def jac_hess(t):
            A = jnp.linalg.inv(t * eye - J)
            Ah, Ath = A @ hb, A.T @ hb
            AAh, AtAth = A @ Ah, A.T @ Ath
            jac = beta * N - 0.5 * jnp.trace(A) - 0.25 * beta * jnp.sum(Ath * Ah)
            hess = (0.5 * jnp.trace(A @ A)
                    + 0.25 * beta * (jnp.sum(Ath * AAh) + jnp.sum(AtAth * Ah)))
            return jac, hess

        def step(_, t):
            jac, hess = jac_hess(t)
            return jnp.where(jnp.abs(jac) < tol, t, t - jac / hess)

        t_star = lax.fori_loop(0, max_iter, step, t0)
        A = jnp.linalg.inv(t_star * eye - J)
        mag = 0.25 * beta * (A @ hb + A.T @ hb)
        return t_star, mag

    ts, ms = jax.vmap(per_batch)(h)
    return ts.reshape(B, 1), ms


if __name__ == "__main__":
    B, N, D = 2, 8, 32   # batch, num_spins, dim

    key = jax.random.PRNGKey(0)
    k1, k2 = jax.random.split(key)
    # nn.Parameter init: normal(0, 1/sqrt(num_spins*dim))
    J_raw = jax.random.normal(k1, (N, N), dtype=jnp.float32) * (1.0 / (N * D) ** 0.5)
    h = jax.random.normal(k2, (B, N, D), dtype=jnp.float32)
    beta = jnp.array([1.0], dtype=jnp.float32)
    t0 = jnp.array([1.0], dtype=jnp.float32)

    out = vector_spin_forward(J_raw, h, beta, t0)
    jax.block_until_ready(out.t_star)
    jax.block_until_ready(out.magnetizations)

    t_ref, m_ref = _reference_forward(J_raw, h, float(beta[0]), float(t0[0]))
    ok_t = bool(jnp.allclose(out.t_star, t_ref, rtol=1e-3, atol=1e-3))
    ok_m = bool(jnp.allclose(out.magnetizations, m_ref, rtol=1e-3, atol=1e-3))
    if not (ok_t and ok_m):
        raise AssertionError(f"mismatch vs reference: t_ok={ok_t}, m_ok={ok_m}")

    print("KERNEL_OK")
</pallas_src>

<mosaic_0001>
module attributes {stable_mosaic.version = 11 : i64} {
  func.func @_spin_kernel(%arg0: i32, %arg1: memref<1xf32, #tpu.memory_space<smem>>, %arg2: memref<1xf32, #tpu.memory_space<smem>>, %arg3: memref<8x1xf32, #tpu.memory_space<vmem>>, %arg4: memref<8x8xf32, #tpu.memory_space<vmem>>, %arg5: memref<8x64xf32, #tpu.memory_space<vmem>>, %arg6: memref<1x64xf32, #tpu.memory_space<vmem>>, %arg7: memref<8x64xf32, #tpu.memory_space<vmem>>) attributes {dimension_semantics = [#tpu.dimension_semantics<parallel>], iteration_bounds = array<i64: 1>, scalar_prefetch = 0 : i64, scratch_operands = 0 : i64, tpu.core_type = #tpu.core_type<tc>, window_params = [{transform_indices = @transform_0, window_bounds = array<i64: 1>}, {transform_indices = @transform_1, window_bounds = array<i64: 1>}, {pipeline_mode = #tpu.pipeline_mode<synchronous>, transform_indices = @transform_2, window_bounds = array<i64: 8, 1>}, {pipeline_mode = #tpu.pipeline_mode<synchronous>, transform_indices = @transform_3, window_bounds = array<i64: 8, 8>}, {transform_indices = @transform_4, window_bounds = array<i64: 8, 64>}, {transform_indices = @transform_5, window_bounds = array<i64: 1, 64>}, {transform_indices = @transform_6, window_bounds = array<i64: 8, 64>}]} {
    %c0 = arith.constant 0 : index
    %0 = memref.load %arg1[%c0] : memref<1xf32, #tpu.memory_space<smem>>
    %c0_0 = arith.constant 0 : index
    %1 = memref.load %arg2[%c0_0] : memref<1xf32, #tpu.memory_space<smem>>
    %c0_1 = arith.constant 0 : index
    %c0_2 = arith.constant 0 : index
    %2 = vector.load %arg3[%c0_1, %c0_2] : memref<8x1xf32, #tpu.memory_space<vmem>>, vector<8x1xf32>
    %c0_3 = arith.constant 0 : index
    %c0_4 = arith.constant 0 : index
    %3 = vector.load %arg4[%c0_3, %c0_4] : memref<8x8xf32, #tpu.memory_space<vmem>>, vector<8x8xf32>
    %c0_5 = arith.constant 0 : index
    %c0_6 = arith.constant 0 : index
    %4 = vector.load %arg5[%c0_5, %c0_6] : memref<8x64xf32, #tpu.memory_space<vmem>>, vector<8x64xf32>
    %5 = tpu.iota {dimensions = array<i32: 0>} : vector<64x2xi32>
    %6 = tpu.iota {dimensions = array<i32: 1>} : vector<64x2xi32>
    %c32_i32 = arith.constant 32 : i32
    %7 = vector.broadcast %c32_i32 : i32 to vector<64x2xi32>
    %8 = arith.muli %6, %7 : vector<64x2xi32>
    %9 = arith.cmpi sge, %5, %8 : vector<64x2xi32>
    %c1_i32 = arith.constant 1 : i32
    %10 = vector.broadcast %c1_i32 : i32 to vector<64x2xi32>
    %11 = arith.addi %6, %10 : vector<64x2xi32>
    %c32_i32_7 = arith.constant 32 : i32
    %12 = vector.broadcast %c32_i32_7 : i32 to vector<64x2xi32>
    %13 = arith.muli %11, %12 : vector<64x2xi32>
    %14 = arith.cmpi slt, %5, %13 : vector<64x2xi32>
    %15 = arith.andi %9, %14 : vector<64x2xi1>
    %16 = arith.extui %15 : vector<64x2xi1> to vector<64x2xi32>
    %17 = arith.sitofp %16 : vector<64x2xi32> to vector<64x2xf32>
    %18 = tpu.iota {dimensions = array<i32: 0>} : vector<2x64xi32>
    %19 = tpu.iota {dimensions = array<i32: 1>} : vector<2x64xi32>
    %c32_i32_8 = arith.constant 32 : i32
    %20 = vector.broadcast %c32_i32_8 : i32 to vector<2x64xi32>
    %21 = arith.muli %18, %20 : vector<2x64xi32>
    %22 = arith.cmpi sge, %19, %21 : vector<2x64xi32>
    %c1_i32_9 = arith.constant 1 : i32
    %23 = vector.broadcast %c1_i32_9 : i32 to vector<2x64xi32>
    %24 = arith.addi %18, %23 : vector<2x64xi32>
    %c32_i32_10 = arith.constant 32 : i32
    %25 = vector.broadcast %c32_i32_10 : i32 to vector<2x64xi32>
    %26 = arith.muli %24, %25 : vector<2x64xi32>
    %27 = arith.cmpi slt, %19, %26 : vector<2x64xi32>
    %28 = arith.andi %22, %27 : vector<2x64xi1>
    %29 = arith.extui %28 : vector<2x64xi1> to vector<2x64xi32>
    %30 = arith.sitofp %29 : vector<2x64xi32> to vector<2x64xf32>
    %cst = arith.constant dense<0.000000e+00> : vector<8x64xf32>
    %31 = tpu.matmul %3, %4, %cst {dimension_numbers = #tpu.dot_dimension_numbers<[0], [0], [1], [1], [0, 1, 1, 1], [], []>} : vector<8x8xf32>, vector<8x64xf32>, vector<8x64xf32> -> vector<8x64xf32>
    %32 = arith.mulf %31, %31 : vector<8x64xf32>
    %cst_11 = arith.constant dense<0.000000e+00> : vector<8x2xf32>
    %33 = tpu.matmul %32, %17, %cst_11 {dimension_numbers = #tpu.dot_dimension_numbers<[1], [0], [0], [1], [0, 0, 1, 1], [], []>} : vector<8x64xf32>, vector<64x2xf32>, vector<8x2xf32> -> vector<8x2xf32>
    %cst_12 = arith.constant 8.000000e+00 : f32
    %34 = arith.mulf %0, %cst_12 : f32
    %35 = vector.broadcast %1 : f32 to vector<1x2xf32>
    %c0_i32 = arith.constant 0 : i32
    %cst_13 = arith.constant 0x7F800000 : f32
    %36:3 = scf.while (%arg8 = %c0_i32, %arg9 = %35, %arg10 = %cst_13) : (i32, vector<1x2xf32>, f32) -> (i32, vector<1x2xf32>, f32) {
      %c40_i32 = arith.constant 40 : i32
      %51 = arith.cmpi slt, %arg8, %c40_i32 : i32
      %cst_23 = arith.constant 9.99999974E-6 : f32
      %52 = arith.cmpf oge, %arg10, %cst_23 : f32
      %53 = arith.andi %51, %52 : i1
      scf.condition(%53) %arg8, %arg9, %arg10 : i32, vector<1x2xf32>, f32
    } do {
    ^bb0(%arg8: i32, %arg9: vector<1x2xf32>, %arg10: f32):
      %51 = vector.broadcast %arg9 : vector<1x2xf32> to vector<8x2xf32>
      %52 = vector.broadcast %2 : vector<8x1xf32> to vector<8x2xf32>
      %53 = arith.subf %51, %52 : vector<8x2xf32>
      %cst_23 = arith.constant 1.000000e+00 : f32
      %54 = vector.broadcast %cst_23 : f32 to vector<8x2xf32>
      %55 = arith.divf %54, %53 : vector<8x2xf32>
      %56 = arith.mulf %55, %55 : vector<8x2xf32>
      %cst_24 = arith.constant dense<0.000000e+00> : vector<2xf32>
      %57 = vector.multi_reduction <add>, %55, %cst_24 [0] : vector<8x2xf32> to vector<2xf32>
      %58 = vector.shape_cast %57 : vector<2xf32> to vector<1x2xf32>
      %cst_25 = arith.constant dense<0.000000e+00> : vector<2xf32>
      %59 = vector.multi_reduction <add>, %56, %cst_25 [0] : vector<8x2xf32> to vector<2xf32>
      %60 = vector.shape_cast %59 : vector<2xf32> to vector<1x2xf32>
      %61 = arith.mulf %33, %56 : vector<8x2xf32>
      %cst_26 = arith.constant dense<0.000000e+00> : vector<2xf32>
      %62 = vector.multi_reduction <add>, %61, %cst_26 [0] : vector<8x2xf32> to vector<2xf32>
      %63 = vector.shape_cast %62 : vector<2xf32> to vector<1x2xf32>
      %64 = arith.mulf %33, %56 : vector<8x2xf32>
      %65 = arith.mulf %64, %55 : vector<8x2xf32>
      %cst_27 = arith.constant dense<0.000000e+00> : vector<2xf32>
      %66 = vector.multi_reduction <add>, %65, %cst_27 [0] : vector<8x2xf32> to vector<2xf32>
      %67 = vector.shape_cast %66 : vector<2xf32> to vector<1x2xf32>
      %cst_28 = arith.constant 5.000000e-01 : f32
      %68 = vector.broadcast %cst_28 : f32 to vector<1x2xf32>
      %69 = arith.mulf %68, %58 : vector<1x2xf32>
      %70 = vector.broadcast %34 : f32 to vector<1x2xf32>
      %71 = arith.subf %70, %69 : vector<1x2xf32>
      %cst_29 = arith.constant 2.500000e-01 : f32
      %72 = arith.mulf %cst_29, %0 : f32
      %73 = vector.broadcast %72 : f32 to vector<1x2xf32>
      %74 = arith.mulf %73, %63 : vector<1x2xf32>
      %75 = arith.subf %71, %74 : vector<1x2xf32>
      %cst_30 = arith.constant 5.000000e-01 : f32
      %76 = vector.broadcast %cst_30 : f32 to vector<1x2xf32>
      %77 = arith.mulf %76, %60 : vector<1x2xf32>
      %cst_31 = arith.constant 5.000000e-01 : f32
      %78 = arith.mulf %cst_31, %0 : f32
      %79 = vector.broadcast %78 : f32 to vector<1x2xf32>
      %80 = arith.mulf %79, %67 : vector<1x2xf32>
      %81 = arith.addf %77, %80 : vector<1x2xf32>
      %82 = math.absf %81 : vector<1x2xf32>
      %cst_32 = arith.constant 1.000000e-30 : f32
      %83 = vector.broadcast %cst_32 : f32 to vector<1x2xf32>
      %84 = arith.cmpf ogt, %82, %83 : vector<1x2xf32>
      %cst_33 = arith.constant 1.000000e-30 : f32
      %85 = vector.broadcast %cst_33 : f32 to vector<1x2xf32>
      %86 = arith.select %84, %81, %85 : vector<1x2xi1>, vector<1x2xf32>
      %87 = math.absf %75 : vector<1x2xf32>
      %cst_34 = arith.constant 9.99999974E-6 : f32
      %88 = vector.broadcast %cst_34 : f32 to vector<1x2xf32>
      %89 = arith.cmpf olt, %87, %88 : vector<1x2xf32>
      %90 = arith.divf %75, %86 : vector<1x2xf32>
      %91 = arith.subf %arg9, %90 : vector<1x2xf32>
      %92 = arith.select %89, %arg9, %91 : vector<1x2xi1>, vector<1x2xf32>
      %c1_i32_35 = arith.constant 1 : i32
      %93 = arith.addi %arg8, %c1_i32_35 : i32
      %94 = math.absf %75 : vector<1x2xf32>
      %95 = vector.shape_cast %94 : vector<1x2xf32> to vector<1x1x2xf32>
      %cst_36 = arith.constant dense<0xFF800000> : vector<1xf32>
      %96 = vector.multi_reduction <maximumf>, %95, %cst_36 [1, 2] : vector<1x1x2xf32> to vector<1xf32>
      %97 = vector.shape_cast %96 : vector<1xf32> to vector<1x1x1xf32>
      %98 = vector.extract %97[0, 0, 0] : f32 from vector<1x1x1xf32>
      scf.yield %93, %92, %98 : i32, vector<1x2xf32>, f32
    }
    %37 = vector.broadcast %36#1 : vector<1x2xf32> to vector<8x2xf32>
    %38 = vector.broadcast %2 : vector<8x1xf32> to vector<8x2xf32>
    %39 = arith.subf %37, %38 : vector<8x2xf32>
    %cst_14 = arith.constant 1.000000e+00 : f32
    %40 = vector.broadcast %cst_14 : f32 to vector<8x2xf32>
    %41 = arith.divf %40, %39 : vector<8x2xf32>
    %cst_15 = arith.constant dense<0.000000e+00> : vector<8x64xf32>
    %42 = tpu.matmul %41, %30, %cst_15 {dimension_numbers = #tpu.dot_dimension_numbers<[1], [0], [0], [1], [0, 0, 1, 1], [], []>} : vector<8x2xf32>, vector<2x64xf32>, vector<8x64xf32> -> vector<8x64xf32>
    %cst_16 = arith.constant 5.000000e-01 : f32
    %43 = arith.mulf %cst_16, %0 : f32
    %44 = arith.mulf %42, %31 : vector<8x64xf32>
    %cst_17 = arith.constant dense<0.000000e+00> : vector<8x64xf32>
    %45 = tpu.matmul %3, %44, %cst_17 {dimension_numbers = #tpu.dot_dimension_numbers<[1], [0], [0], [1], [0, 0, 1, 1], [], []>} : vector<8x8xf32>, vector<8x64xf32>, vector<8x64xf32> -> vector<8x64xf32>
    %46 = vector.broadcast %43 : f32 to vector<8x64xf32>
    %47 = arith.mulf %46, %45 : vector<8x64xf32>
    %cst_18 = arith.constant dense<0.000000e+00> : vector<1x64xf32>
    %48 = tpu.matmul %36#1, %30, %cst_18 {dimension_numbers = #tpu.dot_dimension_numbers<[1], [0], [0], [1], [0, 0, 1, 1], [], []>} : vector<1x2xf32>, vector<2x64xf32>, vector<1x64xf32> -> vector<1x64xf32>
    %c0_19 = arith.constant 0 : index
    %c0_20 = arith.constant 0 : index
    %49 = vector.load %arg6[%c0_19, %c0_20] : memref<1x64xf32, #tpu.memory_space<vmem>>, vector<1x64xf32>
    tpu.vector_store %arg6[%c0_19, %c0_20], %48 {strides = array<i32>} : memref<1x64xf32, #tpu.memory_space<vmem>>, vector<1x64xf32>,
    %c0_21 = arith.constant 0 : index
    %c0_22 = arith.constant 0 : index
    %50 = vector.load %arg7[%c0_21, %c0_22] : memref<8x64xf32, #tpu.memory_space<vmem>>, vector<8x64xf32>
    tpu.vector_store %arg7[%c0_21, %c0_22], %47 {strides = array<i32>} : memref<8x64xf32, #tpu.memory_space<vmem>>, vector<8x64xf32>,
    return
  }
  func.func @transform_0(%arg0: i32) -> i32 {
    %c0_i32 = arith.constant 0 : i32
    %c0_i32_0 = arith.constant 0 : i32
    return %c0_i32 : i32
  }
  func.func @transform_1(%arg0: i32) -> i32 {
    %c0_i32 = arith.constant 0 : i32
    %c0_i32_0 = arith.constant 0 : i32
    return %c0_i32 : i32
  }
  func.func @transform_2(%arg0: i32) -> (i32, i32) {
    %c0_i32 = arith.constant 0 : i32
    %c0_i32_0 = arith.constant 0 : i32
    %c0_i32_1 = arith.constant 0 : i32
    return %c0_i32, %c0_i32_0 : i32, i32
  }
  func.func @transform_3(%arg0: i32) -> (i32, i32) {
    %c0_i32 = arith.constant 0 : i32
    %c0_i32_0 = arith.constant 0 : i32
    %c0_i32_1 = arith.constant 0 : i32
    return %c0_i32, %c0_i32_0 : i32, i32
  }
  func.func @transform_4(%arg0: i32) -> (i32, i32) {
    %c0_i32 = arith.constant 0 : i32
    %c0_i32_0 = arith.constant 0 : i32
    return %c0_i32, %arg0 : i32, i32
  }
  func.func @transform_5(%arg0: i32) -> (i32, i32) {
    %c0_i32 = arith.constant 0 : i32
    %c0_i32_0 = arith.constant 0 : i32
    return %c0_i32, %arg0 : i32, i32
  }
  func.func @transform_6(%arg0: i32) -> (i32, i32) {
    %c0_i32 = arith.constant 0 : i32
    %c0_i32_0 = arith.constant 0 : i32
    return %c0_i32, %arg0 : i32, i32
  }
}

</mosaic_0001>

<bundles_post_ra>
// kernel: tpu_custom_call.1
= control target key start
LH: loop header
LB: loop body
LE: loop exit
PB: predicated region body
PF: predicated region fallthrough
CT: control target
= control target key end

     0   :  { %14 = vsyncpa [#allocation5], 0  ;;  %s985_s0 = inlined_call_operand.<no memory space> [shape: f32[1], index: 0, kind: input, shape index: {}]   ;;  %s986_s1 = inlined_call_operand.<no memory space> [shape: f32[1], index: 1, kind: input, shape index: {}]   ;;  %s987_s2 = inlined_call_operand.vmem [shape: f32[8,1], index: 2, kind: input, shape index: {}]   ;;  %s988_s3 = inlined_call_operand.vmem [shape: f32[8,8], index: 3, kind: input, shape index: {}]   ;;  %s989_s4 = inlined_call_operand.vmem [shape: f32[8,64], index: 4, kind: input, shape index: {}]   ;;  %s990_s5 = inlined_call_operand.hbm [shape: f32[1,64], index: 5, kind: output, shape index: {0}]   ;;  %s991_s6 = inlined_call_operand.hbm [shape: f32[8,64], index: 6, kind: output, shape index: {1}]  }
   0x1   :  { %v866_v0 = vld [vmem:[%s988_s3] sm:$0xff] }
   0x2   :  { %15 = vsyncpa [#allocation7], 0  ;;  %v871_v1 = vld [vmem:[%s987_s2] sm:$0xff]  ;;  %v31_v2 = vlaneseq  ;;  %93 = vxpose.xlu0.b32.start.end [1/1] (short) (narrow) %v866_v0, 8  ;;  %v820_v3 = vmov 0.0   ;;  %vm992_vm0 = vmmov 0   ;;  %v275_v27 = vstv %s986_s1  }
   0x3   :  { %671 = vmatprep.subr.mxu0 %v820_v3  ;;  %v30_v4 = vld [vmem:[%s989_s4] sm:$0xff]  ;;  %673 = vmatprep.mubr.msk.f32.mxu0 %vm992_vm0, %v820_v3  ;;  %v822_v7 = vmov 0.0|0.0   ;;  %v823_v20 = vmov 1.0|1.0   ;;  %s274_s4 = smul.f32 8.0, %s985_s0  ;;  %s901_s29 = smov 0  }
   0x4   :  { %v32_v5 = vshrl.u32 %v31_v2, 7  ;;  %v41_v6 = vand.u32 127, %v31_v2  ;;  %672 = vmatpush3.msra.mxu0 %v30_v4  ;;  %710 = vmatprep.subr.bf16.mxu1 %v822_v7 }
   0x5   :  { %692 = vmatprep.mubr.msk.f32.mxu1 %vm992_vm0, %v820_v3 }
   0x6   :  { %v42_v8 = vmul.u32 32, %v41_v6  ;;  %v51_v9 = vadd.s32 1, %v41_v6  ;;  %v85_v10 = vmul.u32 32, %v32_v5  ;;  %v87_v11 = vadd.s32 1, %v32_v5 }
   0x7   :  { %v33_v12 = vadd.s32 8, %v32_v5  ;;  %v34_v15 = vadd.s32 16, %v32_v5  ;;  %v35_v16 = vadd.s32 24, %v32_v5  ;;  %v36_v17 = vadd.s32 32, %v32_v5 }
   0x8   :  { %v52_v13 = vmul.u32 32, %v51_v9  ;;  %vm86_vm1 = vcmp.ge.s32.totalorder %v41_v6, %v85_v10  ;;  %v88_v14 = vmul.u32 32, %v87_v11  ;;  %vm43_vm2 = vcmp.ge.s32.totalorder %v32_v5, %v42_v8 }
   0x9   :  { %vm44_vm4 = vcmp.ge.s32.totalorder %v33_v12, %v42_v8  ;;  %vm45_vm9 = vcmp.ge.s32.totalorder %v34_v15, %v42_v8  ;;  %v37_v19 = vadd.s32 40, %v32_v5  ;;  %vm46_vm12 = vcmp.ge.s32.totalorder %v35_v16, %v42_v8 }
   0xa   :  { %vm89_vm3 = vcmp.lt.s32.totalorder %v41_v6, %v88_v14  ;;  %vm53_vm5 = vcmp.lt.s32.totalorder %v32_v5, %v52_v13  ;;  %vm54_vm6 = vcmp.lt.s32.totalorder %v33_v12, %v52_v13  ;;  %vm55_vm10 = vcmp.lt.s32.totalorder %v34_v15, %v52_v13 }
   0xb   :  { %vm90_vm7 = vmand %vm86_vm1, %vm89_vm3  ;;  %vm56_vm13 = vcmp.lt.s32.totalorder %v35_v16, %v52_v13  ;;  %vm47_vm0 = vcmp.ge.s32.totalorder %v36_v17, %v42_v8  ;;  %vm57_vm1 = vcmp.lt.s32.totalorder %v36_v17, %v52_v13  ;;  %v38_v22 = vadd.s32 48, %v32_v5 }
   0xc   :  { %v883_v18 = vsel %vm90_vm7, 1.0, %v820_v3  ;;  %vm61_vm8 = vmand %vm43_vm2, %vm53_vm5  ;;  %vm48_vm7 = vcmp.ge.s32.totalorder %v37_v19, %v42_v8  ;;  %vm58_vm2 = vcmp.lt.s32.totalorder %v37_v19, %v52_v13  ;;  %v39_v23 = vadd.s32 56, %v32_v5 }
   0xd   :  { %vm62_vm11 = vmand %vm44_vm4, %vm54_vm6 }
   0xe   :  { %vm711_vm14 = vmpackc.low %vm62_vm11, %vm61_vm8  ;;  %vm125_vm11 = vcmask 64512  }
   0xf   :  { %712 = vmatpush3.bf16.msk.msra.mxu1 %vm711_vm14, %v823_v20  ;;  %vm63_vm15 = vmand %vm45_vm9, %vm55_vm10  ;;  %vm49_vm9 = vcmp.ge.s32.totalorder %v38_v22, %v42_v8  ;;  %vm50_vm10 = vcmp.ge.s32.totalorder %v39_v23, %v42_v8  ;;  %vm59_vm14 = vcmp.lt.s32.totalorder %v38_v22, %v52_v13 }
  0x10   :  { %713 = vmatprep.subr.bf16.mxu1 %v822_v7  ;;  %vm64_vm3 = vmand %vm46_vm12, %vm56_vm13  ;;  %vm60_vm12 = vcmp.lt.s32.totalorder %v39_v23, %v52_v13 }
  0x11   :  { %vm714_vm5 = vmpackc.low %vm64_vm3, %vm63_vm15 }
  0x12   :  { %vm65_vm4 = vmand %vm47_vm0, %vm57_vm1  ;;  %vm200_vm0 = vcmask 523264  }
  0x13   :  { %715 = vmatpush3.bf16.msk.msra.mxu1 %vm714_vm5, %v823_v20  ;;  %vm66_vm6 = vmand %vm48_vm7, %vm58_vm2 }
  0x14   :  { %716 = vmatprep.subr.bf16.mxu1 %v822_v7  ;;  %vm717_vm8 = vmpackc.low %vm66_vm6, %vm65_vm4 }
  0x15   :  { %vm67_vm13 = vmand %vm49_vm9, %vm59_vm14 }
  0x16   :  { %vm68_vm3 = vmand %vm50_vm10, %vm60_vm12 }
  0x17   :  { %718 = vmatpush3.bf16.msk.msra.mxu1 %vm717_vm8, %v823_v20  ;;  %vm720_vm15 = vmpackc.low %vm68_vm3, %vm67_vm13 }
  0x18   :  { %719 = vmatprep.subr.bf16.mxu1 %v822_v7 }
  0x1b   :  { %721 = vmatpush3.bf16.msk.msra.mxu1 %vm720_vm15, %v823_v20 }
  0x82   :  { %v109_v21 = vpop.trf.xlu0 }
  0x83   :  { %674 = vmatmul.mubr.msk.f32.vlgmr.msra.gmra.mrb[0].mxu0 %vm125_vm11, %v109_v21 }
 0x156   :  { %v886_v24 = vpop.f32.mrb[0].mxu0 }
 0x157   :  { %v199_v25 = vmul.f32 %v886_v24, %v886_v24  ;;  %v675_v26 = vpop.f32.mrb[1].mxu0 }
 0x159   :  { %693 = vmatmul.mubr.msk.f32.vlgmr.msra.gmra.mrb[0].mxu1 %vm200_vm0, %v199_v25 }
 0x22c   :  { %v897_v28 = vpop.f32.mrb[0].mxu1 }
 0x22d   :  { %v694_v29 = vpop.f32.mrb[1].mxu1 }
 0x22e LB: > { %v824_v30 = vmov 0   ;;  %vm295_vm1 = vcmask 15360   ;;  %s329_s7 = smul.f32 0.25, %s985_s0  ;;  %v327_v62 = vstv %s274_s4  ;;  %s347_s29 = sadd.s32 1, %s818_s29   ;;  %s818_s29 = sphi %s901_s29, %s347_s29   ;;  %v814_v27 = vphi %v275_v27, %v994_v27  }
 0x22f   : > { %748 = vset.pattern.permute.xlu0 %v824_v30  ;;  %s334_s10 = smul.f32 0.5, %s985_s0  ;;  %p280_p0 = scmp.lt.s32.totalorder %s347_s29, 40 }
 0x230   : > { %288 = vperm.xlu0 %748, %v871_v1   ;;  %v330_v63 = vstv %s329_s7 }
 0x231   : > { %v335_v6 = vstv %s334_s10 }
 0x2af   : > { %v289_v31 = vpop.permute.xlu0 %288 }
 0x2b0   : > { %v291_v32 = vsub.f32 %v814_v27, %v289_v31 }
 0x2b2   : > { %749 = vrcp.f32 %v291_v32 }
 0x2bc   : > { %v750_v33 = vpop.eup %749 }
 0x2bd   : > { %v294_v34 = vmul.f32 %v750_v33, %v750_v33  ;;  %v296_v35 = vsel %vm295_vm1, %v750_v33, 0.0 }
 0x2be   : > { %v297_v36 = vrot.slane %v296_v35, 4 }
 0x2bf   : > { %v310_v37 = vmul.f32 %v294_v34, %v897_v28  ;;  %v303_v38 = vsel %vm295_vm1, %v294_v34, 0.0 }
 0x2c0   : > { %v298_v39 = vadd.f32 %v297_v36, %v296_v35  ;;  %v304_v40 = vrot.slane %v303_v38, 4 }
 0x2c1   : > { %v311_v41 = vsel %vm295_vm1, %v310_v37, 0.0  ;;  %v318_v42 = vmul.f32 %v750_v33, %v310_v37 }
 0x2c2   : > { %v299_v43 = vrot.slane %v298_v39, 2  ;;  %v312_v44 = vrot.slane %v311_v41, 4  ;;  %v305_v45 = vadd.f32 %v304_v40, %v303_v38 }
 0x2c3   : > { %v319_v46 = vsel %vm295_vm1, %v318_v42, 0.0 }
 0x2c4   : > { %v300_v47 = vadd.f32 %v299_v43, %v298_v39  ;;  %v313_v48 = vadd.f32 %v312_v44, %v311_v41  ;;  %v320_v49 = vrot.slane %v319_v46, 4  ;;  %v306_v50 = vrot.slane %v305_v45, 2 }
 0x2c6   : > { %v301_v51 = vrot.slane %v300_v47, 1  ;;  %v314_v52 = vrot.slane %v313_v48, 2  ;;  %v321_v53 = vadd.f32 %v320_v49, %v319_v46  ;;  %v307_v54 = vadd.f32 %v306_v50, %v305_v45 }
 0x2c8   : > { %v302_v55 = vadd.f32 %v301_v51, %v300_v47  ;;  %v315_v56 = vadd.f32 %v314_v52, %v313_v48  ;;  %v322_v57 = vrot.slane %v321_v53, 2  ;;  %v308_v58 = vrot.slane %v307_v54, 1 }
 0x2ca   : > { %v316_v59 = vrot.slane %v315_v56, 1  ;;  %v323_v60 = vadd.f32 %v322_v57, %v321_v53  ;;  %v326_v61 = vmul.f32 0.5, %v302_v55  ;;  %v309_v5 = vadd.f32 %v308_v58, %v307_v54 }
 0x2cc   : > { %v317_v2 = vadd.f32 %v316_v59, %v315_v56  ;;  %v324_v4 = vrot.slane %v323_v60, 1  ;;  %v328_v8 = vsub.f32 %v327_v62, %v326_v61  ;;  %v333_v12 = vmul.f32 0.5, %v309_v5 }
 0x2ce   : > { %v325_v7 = vadd.f32 %v324_v4, %v323_v60  ;;  %v331_v9 = vmul.f32 %v330_v63, %v317_v2 }
 0x2d0   : > { %v332_v10 = vsub.f32 %v328_v8, %v331_v9  ;;  %v336_v11 = vmul.f32 %v335_v6, %v325_v7 }
 0x2d2   : > { %v341_v13 = vand.u32 2147483647, %v332_v10  ;;  %v337_v14 = vadd.f32 %v336_v11, %v333_v12 }
 0x2d4   : > { %v348_v15 = vsel %vm295_vm1, %v341_v13, -inf  ;;  %v338_v16 = vand.u32 2147483647, %v337_v14  ;;  %vm342_vm2 = vcmp.lt.f32.partialorder %v341_v13, 1e-05 }
 0x2d5   : > { %349 = vmax.xlane.f32.xlu0 %v348_v15 }
 0x2d6   : > { %vm339_vm7 = vcmp.gt.f32.partialorder %v338_v16, 1e-30 }
 0x2d7   : > { %v340_v17 = vsel %vm339_vm7, %v337_v14, 1e-30 }
 0x2d8   : > { %751 = vrcp.f32 %v340_v17 }
 0x2e2   : > { %v752_v19 = vpop.eup %751 }
 0x2e3   : > { %v344_v20 = vmul.f32 %v752_v19, %v332_v10 }
 0x2e5   : > { %v345_v21 = vsub.f32 %v814_v27, %v344_v20 }
 0x2e7   : > { %v346_v22 = vsel %vm342_vm2, %v814_v27, %v345_v21  }
 0x2e8   : > { %v994_v27 = vmov %v346_v22 }
 0x362   : > { %v350_v23 = vpop.xlane.xlu0 %349 }
 0x363   : > { %722 = vpush %v350_v23 }
 0x394   : > { %s723_s13 = spop %722 }
 0x395   : > { %p281_p1 = scmp.ge.f32.partialorder %s723_s13, 1e-05 }
 0x397   : > { %p282_p2 = pnand %p281_p1, %p280_p0 }
 0x398   :  { %695 = vmatprep.subr.mxu0 (%p282_p2), %v820_v3  ;;  %vm995_vm5 = vmmov (%p282_p2), 0   ;;  %v825_v25 = vmov (%p282_p2), 0   ;;  %vm364_vm4 = vcmask (%p282_p2), 1041408   ;;  %s826_s0 = smov (%p282_p2), [#allocation6]   ;;  %s827_s15 = smov (%p282_p2), [#allocation4]   ;;  %vm588_vm6 = vcmask (%p282_p2), 516096  }
 0x399   :  { %285 = sbr.rel (!%p282_p2) target bundleno = 558 (0x22e), region = 55  ;;  %697 = vmatprep.mubr.msk.f32.mxu0 (%p282_p2), %vm995_vm5, %v820_v3  ;;  %753 = vset.pattern.permute.xlu0 (%p282_p2), %v825_v25  ;;  %s607_s14 = sshll.u32 (%p282_p2), %s826_s0, 4  ;;  %s608_s14 = int_to_ptr.vmem [resolvable:$true] %s607_s14 }
 0x39a   :  { %354 = vperm.xlu0 (%p282_p2), %753, %v871_v1   ;;  %696 = vmatpush3.msk.msra.mxu0 (%p282_p2), %vm364_vm4, %v883_v18  ;;  %s597_s16 = sshll.u32 (%p282_p2), %s827_s15, 4  ;;  %s756_s17 = scalar_lea.vmem (%p282_p2), %s608_s14, 128  ;;  %s952_s16 = int_to_ptr.vmem [resolvable:$true] %s597_s16 }
 0x39b   :  { %700 = vmatprep.subr.mxu0 (%p282_p2), %v820_v3  ;;  %p757_p3 = scmp.ne.s32.totalorder (%p282_p2), %s608_s14, %s756_s17  ;;  %p761_p4 = scmp.lt.s32.totalorder (%p282_p2), %s608_s14, %s608_s14 }
 0x39c   :  { %p762_p5 = scmp.lt.s32.totalorder (%p282_p2), %s756_s17, %s756_s17 }
 0x39e   :  { %p763_p6 = por (%p282_p2), %p762_p5, %p761_p4 }
 0x3a0   :  { %p764_p7 = pnand %p763_p6, %p757_p3 }
 0x419   :  { %v355_v26 = vpop.permute.xlu0 %354 }
 0x41a   :  { %v357_v27 = vsub.f32 %v346_v22, %v355_v26 }
 0x41c   :  { %754 = vrcp.f32 %v357_v27 }
 0x426   :  { %v755_v29 = vpop.eup %754 }
 0x427   :  { %698 = vmatmul.mubr.msk.f32.vlgmr.msra.gmra.mrb[2].mxu0 %vm295_vm1, %v755_v29 }
 0x428   :  { %702 = vmatprep.mubr.msk.f32.mxu0 %vm995_vm5, %v820_v3 }
 0x4fa   :  { %v434_v28 = vpop.f32.mrb[2].mxu0 }
 0x4fb   :  { %v439_v30 = vmul.f32 %v434_v28, %v886_v24  ;;  %v699_v31 = vpop.f32.mrb[3].mxu0 }
 0x4fd   :  { %701 = vmatpush3.msra.mxu0 %v439_v30 }
 0x4fe   :  { %703 = vmatmul.mubr.msk.f32.vlgmr.msra.gmra.mrb[4].mxu0 %vm125_vm11, %v866_v0  ;;  %705 = vmatprep.subr.mxu0 %v820_v3 }
 0x4ff   :  { %706 = vmatpush3.msk.msra.mxu0 %vm364_vm4, %v883_v18  ;;  %707 = vmatprep.mubr.msk.f32.mxu0 %vm995_vm5, %v820_v3 }
 0x502   :  { %708 = vmatmul.mubr.msk.f32.vlgmr.msra.gmra.mrb[6].mxu0 %vm295_vm1, %v346_v22 }
 0x5d1   :  { %v509_v1 = vpop.f32.mrb[4].mxu0 }
 0x5d2   :  { %v514_v24 = vmul.f32 %v509_v1, %v335_v6  ;;  %v704_v32 = vpop.f32.mrb[5].mxu0 }
 0x5d4   :  { %590 = vst.msk [vmem:[#allocation6] sm:$0xff] %vm200_vm0, %v514_v24 }
 0x5d5   :  { %v584_v0 = vpop.f32.mrb[6].mxu0 }
 0x5d6   :  { %767 = shalt.err (!%p764_p7)
}
 0x5d7   :  { %s768_s20 = scalar_lea.hbm %s991_s6, 128 }
 0x5d8   :  { %p769_p8 = scmp.ne.s32.totalorder %s991_s6, %s768_s20  ;;  %p772_p9 = scmp.lt.u32.totalorder %s768_s20, %s991_s6 }
 0x5da   :  { %p774_p10 = pnand %p772_p9, %p769_p8 }
 0x5dc   :  { %777 = shalt.err (!%p774_p10)
}
 0x5dd   :  { %610 = dma.vmem_to_hbm [thread:$0]  %s608_s14, 128, %s991_s6, [#allocation7]   ;;  %v709_v3 = vpop.f32.mrb[7].mxu0  ;;  %589 = vst.msk [vmem:[#allocation4] sm:$0x1] %vm588_vm6, %v584_v0 }
 0x5de   :  { %s778_s2 = scalar_lea.vmem %s952_s16, 16  ;;  %s782_s3 = scalar_lea.vmem %s952_s16, 32 }
 0x5df   :  { %p779_p11 = scmp.ne.s32.totalorder %s952_s16, %s778_s2  ;;  %p783_p12 = scmp.lt.s32.totalorder %s952_s16, %s952_s16 }
 0x5e0   :  { %p784_p13 = scmp.lt.s32.totalorder %s782_s3, %s778_s2 }
 0x5e2   :  { %p785_p0 = por %p784_p13, %p783_p12 }
 0x5e4   :  { %p786_p1 = pnand %p785_p0, %p779_p11 }
 0x5e6   :  { %789 = shalt.err (!%p786_p1)
}
 0x5e7   :  { %s790_s28 = scalar_lea.hbm %s990_s5, 16 }
 0x5e8   :  { %p791_p2 = scmp.ne.s32.totalorder %s990_s5, %s790_s28  ;;  %p794_p3 = scmp.lt.u32.totalorder %s790_s28, %s990_s5 }
 0x5ea   :  { %p796_p4 = pnand %p794_p3, %p791_p2 }
 0x5ec   :  { %799 = shalt.err (!%p796_p4)
}
 0x5ed   :  { %600 = dma.vmem_to_hbm [thread:$0]  %s952_s16, 16, %s990_s5, [#allocation5]  }
 0x5ee   :  { %808 = dma.done.wait [#allocation5], 16  }
 0x5ef   :  { %809 = vsyncadd [#allocation5], 4294967280 }
 0x5f0   :  { %810 = dma.done.wait [#allocation7], 128  }
 0x5f1   :  { %811 = vsyncadd [#allocation7], 4294967168 }
 0x5f2   :  { %617 = vsyncpa [#allocation5], 1 }
 0x5f3   :  { %618 = vsyncpa [#allocation7], 1 }

</bundles_post_ra>
